<compile_context>
chip_gen: v6e
topology: v6e:2x2x1
jax: 0.10.0
libtpu: 0.0.40
codegen_flags: <defaults>
</compile_context>

<pallas_src>
import jax
import jax.numpy as jnp
from jax.experimental import pallas as pl
from jax.experimental.pallas import tpu as pltpu


def _round_up(x, m):
    return (x + m - 1) // m * m


def _pick_tm(B):
    """Batch tile: full-dim block for tiny batches; otherwise a 16-multiple
    (<= 512) chosen so the grid has at least 2 steps (keeps both v7x TCs busy;
    harmless on single-TC v5e/v6e)."""
    if B <= 16:
        return B
    tm = 512
    while tm > 16 and B <= tm:
        tm //= 2
    return tm


def kuzushiji_kernel(x_ref, wf_ref, bf_ref, w2_ref, b2_ref, o_ref):
    # x_ref:  (tm, C*HW)  bf16   lane-dense input slab
    # wf_ref: (C, 128)    f32    folded (char_model . fc) weight, incl. 1/HW
    # bf_ref: (1, 128)    f32    folded bias
    # w2_ref: (128, NCp)  f32    classifier weight (zero-padded columns)
    # b2_ref: (1, NCp)    f32
    C = wf_ref.shape[0]
    HW = x_ref.shape[1] // C

    # Global-average-pool (as a sum; 1/HW folded into wf) + folded linear,
    # done as C broadcast FMAs on the VPU (K=4 would waste the MXU).
    h = bf_ref[...]                                            # (1, 128)
    for c in range(C):                                         # static loop
        xc = x_ref[:, c * HW:(c + 1) * HW].astype(jnp.float32)  # (tm, HW)
        pooled_c = jnp.sum(xc, axis=-1, keepdims=True)           # (tm, 1) f32
        h = h + pooled_c * wf_ref[c:c + 1, :]                    # (tm, 128)

    # ReLU then classifier: 128 -> NCp (lane-dense, unmasked store).
    h = jnp.maximum(h, 0.0)
    logits = jnp.dot(h, w2_ref[...],
                     preferred_element_type=jnp.float32) + b2_ref[...]
    o_ref[...] = logits.astype(o_ref.dtype)


def kuzushiji_forward(char_input, params, *, tm=None):
    """char_input: (B, C, H, W) float32. Returns logits (B, num_classes)."""
    wcm, bcm, w1, b1, w2, b2 = params
    B, C, H, W = char_input.shape
    HW = H * W
    CHW = C * HW
    num_classes = w2.shape[1]
    nc_pad = _round_up(num_classes, 128)

    # Lane-dense 2-D input, streamed as bf16 (pool accumulates in f32).
    x = char_input.reshape(B, CHW).astype(jnp.bfloat16)

    # Fold char_model-stand-in linear + mean scale into fc (no nonlinearity
    # between them).  TODO(synk): not valid for a real nonlinear backbone.
    w_fold = (wcm @ w1) * (1.0 / HW)            # (C, 128)
    b_fold = bcm @ w1 + b1                      # (1, 128)

    # Lane-dense output: zero-pad classifier columns, slice off below.
    if nc_pad != num_classes:
        w2 = jnp.pad(w2, ((0, 0), (0, nc_pad - num_classes)))
        b2 = jnp.pad(b2, ((0, 0), (0, nc_pad - num_classes)))

    if tm is None:
        tm = _pick_tm(B)
    grid = (pl.cdiv(B, tm),)

    const = lambda a: pl.BlockSpec(a.shape, lambda i: (0,) * a.ndim)

    flops = B * (CHW + 2 * C * 128 + 2 * 128 * nc_pad)
    bytes_accessed = (2 * B * CHW                       # bf16 x stream
                      + 4 * (w_fold.size + b_fold.size + w2.size + b2.size
                             + B * nc_pad))

    out = pl.pallas_call(
        kuzushiji_kernel,
        out_shape=jax.ShapeDtypeStruct((B, nc_pad), jnp.float32),
        grid=grid,
        in_specs=[pl.BlockSpec((tm, CHW), lambda i: (i, 0)),
                  const(w_fold), const(b_fold),
                  const(w2), const(b2)],
        out_specs=pl.BlockSpec((tm, nc_pad), lambda i: (i, 0)),
        compiler_params=pltpu.CompilerParams(
            dimension_semantics=("parallel",)),
        cost_estimate=pl.CostEstimate(flops=flops, transcendentals=0,
                                      bytes_accessed=bytes_accessed),
    )(x, w_fold, b_fold, w2, b2)

    return out[:, :num_classes]


def init_params(key, in_channels, num_classes):
    """Deterministic PyTorch-style (uniform +-1/sqrt(fan_in)) initialization.

    Linear weights are stored as (in_features, out_features) — i.e. PyTorch
    W.T — so y = x @ W + b maps directly onto the MXU.
    """
    def linear(key, fan_in, fan_out):
        kw, kb = jax.random.split(key)
        bound = 1.0 / jnp.sqrt(jnp.float32(fan_in))
        w = jax.random.uniform(kw, (fan_in, fan_out), jnp.float32, -bound, bound)
        b = jax.random.uniform(kb, (1, fan_out), jnp.float32, -bound, bound)
        return w, b

    k_cm, k_fc, k_cls = jax.random.split(key, 3)
    wcm, bcm = linear(k_cm, in_channels, 1280)   # char_model stand-in head
    w1, b1 = linear(k_fc, 1280, 128)             # self.fc
    w2, b2 = linear(k_cls, 128, num_classes)     # self.classifier
    return wcm, bcm, w1, b1, w2, b2


def reference_forward(char_input, params):
    """Pure-JAX f32 reference (mirrors the PyTorch forward)."""
    wcm, bcm, w1, b1, w2, b2 = params
    pooled = jnp.mean(char_input, axis=(2, 3))       # char_model stand-in GAP
    feats = pooled @ wcm + bcm                        # char_model stand-in head
    h = jnp.maximum(feats @ w1 + b1, 0.0)             # fc + relu
    return h @ w2 + b2                                # classifier


if __name__ == "__main__":
    B, C, H, W = 2, 4, 16, 16
    num_classes = 10

    key = jax.random.PRNGKey(0)
    k_x, k_p = jax.random.split(key)
    x = jax.random.normal(k_x, (B, C, H, W), jnp.float32)
    params = init_params(k_p, C, num_classes)

    logits = kuzushiji_forward(x, params)
    logits = jax.block_until_ready(logits)

    ref = reference_forward(x, params)
    assert logits.shape == (B, num_classes)
    # Tolerance loosened vs. pure f32 because x is streamed as bf16 in the
    # kernel (error at the logits is ~1e-3 for these magnitudes).
    assert jnp.allclose(logits, ref, atol=2e-2, rtol=2e-2), "mismatch vs reference"

    print("KERNEL_OK")
</pallas_src>

<mosaic_0001>
module attributes {stable_mosaic.version = 11 : i64} {
  func.func @kuzushiji_kernel(%arg0: i32, %arg1: memref<2x1024xbf16, #tpu.memory_space<vmem>>, %arg2: memref<4x128xf32, #tpu.memory_space<vmem>>, %arg3: memref<1x128xf32, #tpu.memory_space<vmem>>, %arg4: memref<128x128xf32, #tpu.memory_space<vmem>>, %arg5: memref<1x128xf32, #tpu.memory_space<vmem>>, %arg6: memref<2x128xf32, #tpu.memory_space<vmem>>) attributes {dimension_semantics = [#tpu.dimension_semantics<parallel>], iteration_bounds = array<i64: 1>, scalar_prefetch = 0 : i64, scratch_operands = 0 : i64, tpu.core_type = #tpu.core_type<tc>, window_params = [{transform_indices = @transform_0, window_bounds = array<i64: 2, 1024>}, {pipeline_mode = #tpu.pipeline_mode<synchronous>, transform_indices = @transform_1, window_bounds = array<i64: 4, 128>}, {pipeline_mode = #tpu.pipeline_mode<synchronous>, transform_indices = @transform_2, window_bounds = array<i64: 1, 128>}, {pipeline_mode = #tpu.pipeline_mode<synchronous>, transform_indices = @transform_3, window_bounds = array<i64: 128, 128>}, {pipeline_mode = #tpu.pipeline_mode<synchronous>, transform_indices = @transform_4, window_bounds = array<i64: 1, 128>}, {transform_indices = @transform_5, window_bounds = array<i64: 2, 128>}]} {
    %c0 = arith.constant 0 : index
    %c0_0 = arith.constant 0 : index
    %0 = vector.load %arg3[%c0, %c0_0] : memref<1x128xf32, #tpu.memory_space<vmem>>, vector<1x128xf32>
    %c0_1 = arith.constant 0 : index
    %c0_2 = arith.constant 0 : index
    %1 = vector.load %arg1[%c0_1, %c0_2] : memref<2x1024xbf16, #tpu.memory_space<vmem>>, vector<2x256xbf16>
    %2 = arith.extf %1 : vector<2x256xbf16> to vector<2x256xf32>
    %cst = arith.constant dense<0.000000e+00> : vector<2xf32>
    %3 = vector.multi_reduction <add>, %2, %cst [1] : vector<2x256xf32> to vector<2xf32>
    %4 = vector.shape_cast %3 : vector<2xf32> to vector<2x1xf32>
    %c0_3 = arith.constant 0 : index
    %c0_4 = arith.constant 0 : index
    %5 = vector.load %arg2[%c0_3, %c0_4] : memref<4x128xf32, #tpu.memory_space<vmem>>, vector<1x128xf32>
    %6 = vector.broadcast %4 : vector<2x1xf32> to vector<2x128xf32>
    %7 = vector.broadcast %5 : vector<1x128xf32> to vector<2x128xf32>
    %8 = arith.mulf %6, %7 : vector<2x128xf32>
    %9 = vector.broadcast %0 : vector<1x128xf32> to vector<2x128xf32>
    %10 = arith.addf %9, %8 : vector<2x128xf32>
    %c0_5 = arith.constant 0 : index
    %c256 = arith.constant 256 : index
    %11 = vector.load %arg1[%c0_5, %c256] : memref<2x1024xbf16, #tpu.memory_space<vmem>>, vector<2x256xbf16>
    %12 = arith.extf %11 : vector<2x256xbf16> to vector<2x256xf32>
    %cst_6 = arith.constant dense<0.000000e+00> : vector<2xf32>
    %13 = vector.multi_reduction <add>, %12, %cst_6 [1] : vector<2x256xf32> to vector<2xf32>
    %14 = vector.shape_cast %13 : vector<2xf32> to vector<2x1xf32>
    %c1 = arith.constant 1 : index
    %c0_7 = arith.constant 0 : index
    %15 = vector.load %arg2[%c1, %c0_7] : memref<4x128xf32, #tpu.memory_space<vmem>>, vector<1x128xf32>
    %16 = vector.broadcast %14 : vector<2x1xf32> to vector<2x128xf32>
    %17 = vector.broadcast %15 : vector<1x128xf32> to vector<2x128xf32>
    %18 = arith.mulf %16, %17 : vector<2x128xf32>
    %19 = arith.addf %10, %18 : vector<2x128xf32>
    %c0_8 = arith.constant 0 : index
    %c512 = arith.constant 512 : index
    %20 = vector.load %arg1[%c0_8, %c512] : memref<2x1024xbf16, #tpu.memory_space<vmem>>, vector<2x256xbf16>
    %21 = arith.extf %20 : vector<2x256xbf16> to vector<2x256xf32>
    %cst_9 = arith.constant dense<0.000000e+00> : vector<2xf32>
    %22 = vector.multi_reduction <add>, %21, %cst_9 [1] : vector<2x256xf32> to vector<2xf32>
    %23 = vector.shape_cast %22 : vector<2xf32> to vector<2x1xf32>
    %c2 = arith.constant 2 : index
    %c0_10 = arith.constant 0 : index
    %24 = vector.load %arg2[%c2, %c0_10] : memref<4x128xf32, #tpu.memory_space<vmem>>, vector<1x128xf32>
    %25 = vector.broadcast %23 : vector<2x1xf32> to vector<2x128xf32>
    %26 = vector.broadcast %24 : vector<1x128xf32> to vector<2x128xf32>
    %27 = arith.mulf %25, %26 : vector<2x128xf32>
    %28 = arith.addf %19, %27 : vector<2x128xf32>
    %c0_11 = arith.constant 0 : index
    %c768 = arith.constant 768 : index
    %29 = vector.load %arg1[%c0_11, %c768] : memref<2x1024xbf16, #tpu.memory_space<vmem>>, vector<2x256xbf16>
    %30 = arith.extf %29 : vector<2x256xbf16> to vector<2x256xf32>
    %cst_12 = arith.constant dense<0.000000e+00> : vector<2xf32>
    %31 = vector.multi_reduction <add>, %30, %cst_12 [1] : vector<2x256xf32> to vector<2xf32>
    %32 = vector.shape_cast %31 : vector<2xf32> to vector<2x1xf32>
    %c3 = arith.constant 3 : index
    %c0_13 = arith.constant 0 : index
    %33 = vector.load %arg2[%c3, %c0_13] : memref<4x128xf32, #tpu.memory_space<vmem>>, vector<1x128xf32>
    %34 = vector.broadcast %32 : vector<2x1xf32> to vector<2x128xf32>
    %35 = vector.broadcast %33 : vector<1x128xf32> to vector<2x128xf32>
    %36 = arith.mulf %34, %35 : vector<2x128xf32>
    %37 = arith.addf %28, %36 : vector<2x128xf32>
    %cst_14 = arith.constant 0.000000e+00 : f32
    %38 = vector.broadcast %cst_14 : f32 to vector<2x128xf32>
    %39 = arith.maximumf %37, %38 : vector<2x128xf32>
    %c0_15 = arith.constant 0 : index
    %c0_16 = arith.constant 0 : index
    %40 = vector.load %arg4[%c0_15, %c0_16] : memref<128x128xf32, #tpu.memory_space<vmem>>, vector<128x128xf32>
    %cst_17 = arith.constant dense<0.000000e+00> : vector<2x128xf32>
    %41 = tpu.matmul %39, %40, %cst_17 {dimension_numbers = #tpu.dot_dimension_numbers<[1], [0], [0], [1], [0, 0, 1, 1], [], []>} : vector<2x128xf32>, vector<128x128xf32>, vector<2x128xf32> -> vector<2x128xf32>
    %c0_18 = arith.constant 0 : index
    %c0_19 = arith.constant 0 : index
    %42 = vector.load %arg5[%c0_18, %c0_19] : memref<1x128xf32, #tpu.memory_space<vmem>>, vector<1x128xf32>
    %43 = vector.broadcast %42 : vector<1x128xf32> to vector<2x128xf32>
    %44 = arith.addf %41, %43 : vector<2x128xf32>
    %c0_20 = arith.constant 0 : index
    %c0_21 = arith.constant 0 : index
    %45 = vector.load %arg6[%c0_20, %c0_21] : memref<2x128xf32, #tpu.memory_space<vmem>>, vector<2x128xf32>
    tpu.vector_store %arg6[%c0_20, %c0_21], %44 {strides = array<i32>} : memref<2x128xf32, #tpu.memory_space<vmem>>, vector<2x128xf32>,
    return
  }
  func.func @transform_0(%arg0: i32) -> (i32, i32) {
    %c0_i32 = arith.constant 0 : i32
    %c0_i32_0 = arith.constant 0 : i32
    return %arg0, %c0_i32 : i32, i32
  }
  func.func @transform_1(%arg0: i32) -> (i32, i32) {
    %c0_i32 = arith.constant 0 : i32
    %c0_i32_0 = arith.constant 0 : i32
    %c0_i32_1 = arith.constant 0 : i32
    return %c0_i32, %c0_i32_0 : i32, i32
  }
  func.func @transform_2(%arg0: i32) -> (i32, i32) {
    %c0_i32 = arith.constant 0 : i32
    %c0_i32_0 = arith.constant 0 : i32
    %c0_i32_1 = arith.constant 0 : i32
    return %c0_i32, %c0_i32_0 : i32, i32
  }
  func.func @transform_3(%arg0: i32) -> (i32, i32) {
    %c0_i32 = arith.constant 0 : i32
    %c0_i32_0 = arith.constant 0 : i32
    %c0_i32_1 = arith.constant 0 : i32
    return %c0_i32, %c0_i32_0 : i32, i32
  }
  func.func @transform_4(%arg0: i32) -> (i32, i32) {
    %c0_i32 = arith.constant 0 : i32
    %c0_i32_0 = arith.constant 0 : i32
    %c0_i32_1 = arith.constant 0 : i32
    return %c0_i32, %c0_i32_0 : i32, i32
  }
  func.func @transform_5(%arg0: i32) -> (i32, i32) {
    %c0_i32 = arith.constant 0 : i32
    %c0_i32_0 = arith.constant 0 : i32
    return %arg0, %c0_i32 : i32, i32
  }
}

</mosaic_0001>

<bundles_post_ra>
// kernel: tpu_custom_call.1
= control target key start
LH: loop header
LB: loop body
LE: loop exit
PB: predicated region body
PF: predicated region fallthrough
CT: control target
= control target key end

     0   :  { %10 = vsyncpa [#allocation3], 0  ;;  %s512_s0 = inlined_call_operand.hbm [shape: bf16[2,1024], index: 0, kind: input, shape index: {}]   ;;  %s513_s1 = inlined_call_operand.hbm [shape: f32[4,128], index: 1, kind: input, shape index: {}]   ;;  %s514_s2 = inlined_call_operand.vmem [shape: f32[1,128], index: 2, kind: input, shape index: {}]   ;;  %s515_s3 = inlined_call_operand.hbm [shape: f32[128,128], index: 3, kind: input, shape index: {}]   ;;  %s516_s4 = inlined_call_operand.vmem [shape: f32[1,128], index: 4, kind: input, shape index: {}]   ;;  %s517_s5 = inlined_call_operand.hbm [shape: f32[2,128], index: 5, kind: output, shape index: {}]  }
   0x1   :  { %11 = vsyncpa [#allocation6], 0 }
   0x2   :  { %12 = vsyncpa [#allocation4], 0  ;;  %s430_s18 = smov [#allocation5]   ;;  %s431_s20 = smov [#allocation2]  }
   0x3   :  { %s29_s19 = sshll.u32 %s430_s18, 4  ;;  %s19_s21 = sshll.u32 %s431_s20, 4  ;;  %s30_s19 = int_to_ptr.vmem [resolvable:$true] %s29_s19  ;;  %s20_s21 = int_to_ptr.vmem [resolvable:$true] %s19_s21 }
   0x4   :  { %s352_s22 = scalar_lea.vmem %s30_s19, 64  ;;  %p357_p1 = scmp.lt.s32.totalorder %s30_s19, %s30_s19 }
   0x5   :  { %p353_p0 = scmp.ne.s32.totalorder %s30_s19, %s352_s22  ;;  %p358_p2 = scmp.lt.s32.totalorder %s352_s22, %s352_s22 }
   0x7   :  { %p359_p3 = por %p358_p2, %p357_p1 }
   0x9   :  { %p360_p4 = pnand %p359_p3, %p353_p0 }
   0xb   :  { %363 = shalt.err (!%p360_p4)
}
   0xc   :  { %32 = dma.hbm_to_vmem [thread:$0]  %s513_s1, 64, %s30_s19, [#allocation6]  }
   0xd   :  { %s372_s25 = scalar_lea.vmem %s20_s21, 128  ;;  %p377_p6 = scmp.lt.s32.totalorder %s20_s21, %s20_s21 }
   0xe   :  { %p373_p5 = scmp.ne.s32.totalorder %s20_s21, %s372_s25  ;;  %p378_p7 = scmp.lt.s32.totalorder %s372_s25, %s372_s25 }
  0x10   :  { %p379_p8 = por %p378_p7, %p377_p6 }
  0x12   :  { %p380_p9 = pnand %p379_p8, %p373_p5 }
  0x14   :  { %383 = shalt.err (!%p380_p9)
}
  0x15   :  { %22 = dma.hbm_to_vmem [thread:$0]  %s512_s0, 128, %s20_s21, [#allocation3]  }
  0x16   :  { %s432_s28 = smov [#allocation7]  }
  0x17   :  { %s40_s29 = sshll.u32 %s432_s28, 4  ;;  %s41_s29 = int_to_ptr.vmem [resolvable:$true] %s40_s29 }
  0x18   :  { %s392_s30 = scalar_lea.vmem %s41_s29, 2048  ;;  %p397_p11 = scmp.lt.s32.totalorder %s41_s29, %s41_s29 }
  0x19   :  { %p393_p10 = scmp.ne.s32.totalorder %s41_s29, %s392_s30  ;;  %p398_p12 = scmp.lt.s32.totalorder %s392_s30, %s392_s30 }
  0x1b   :  { %p399_p13 = por %p398_p12, %p397_p11 }
  0x1d   :  { %p400_p0 = pnand %p399_p13, %p393_p10 }
  0x1f   :  { %403 = shalt.err (!%p400_p0)
}
  0x20   :  { %s433_s1 = smov 128   ;;  %s434_s6 = smov 8  }
  0x21   :  { %46 = dma.hbm_to_vmem [thread:$0]  %s515_s3, 2048, %s41_s29, [#allocation6], %s433_s1, %s433_s1, %s434_s6  }
  0x22   :  { %424 = dma.done.wait [#allocation3], 128  }
  0x23   :  { %425 = vsyncadd [#allocation3], 4294967168 }
  0x24   :  { %426 = dma.done.wait [#allocation6], 2112  }
  0x25   :  { %427 = vsyncadd [#allocation6], 4294965184  ;;  %v65_v0 = vlaneseq  ;;  %v435_v1 = vmov 1983009808   ;;  %v436_v3 = vmov 0.0   ;;  %v182_v14 = vld [vmem:[#allocation7 + $0x78] sm:$0xff] }
  0x26   :  { %v63_v2 = vunpack.c.l.s4 %v435_v1  ;;  %300 = vmatprep.subr.mxu0 %v436_v3  ;;  %v59_v7 = vld [vmem:[#allocation2] sm:$0x3]  ;;  %v116_v8 = vld [vmem:[#allocation2 + $0x4] sm:$0x3]  ;;  %v91_v9 = vld [vmem:[#allocation2 + $0x2] sm:$0x3] }
  0x27   :  { %v66_v4 = vshrl.u32 %v65_v0, 7  ;;  %v60_v10 = vunpack.c.l.bf16 %v59_v7  ;;  %v117_v11 = vunpack.c.l.bf16 %v116_v8  ;;  %v92_v12 = vunpack.c.l.bf16 %v91_v9  ;;  %v141_v13 = vld [vmem:[#allocation2 + $0x6] sm:$0x3]  ;;  %v181_v15 = vld [vmem:[#allocation7 + $0x70] sm:$0xff]  ;;  %301 = vmatpush3.msra.mxu0 %v182_v14  ;;  %v180_v20 = vld [vmem:[#allocation7 + $0x68] sm:$0xff]  ;;  %s438_s11 = smov [#allocation8]  }
  0x28   :  { %v64_v5 = vunpack.c.0.s8 %v63_v2  ;;  %vm72_vm0 = vcmask 1041408   ;;  %v142_v16 = vunpack.c.l.bf16 %v141_v13  ;;  %302 = vmatprep.subr.mxu0 %v436_v3  ;;  %v179_v26 = vld [vmem:[#allocation7 + $0x60] sm:$0xff]  ;;  %v178_v37 = vld [vmem:[#allocation7 + $0x58] sm:$0xff]  ;;  %v177_v40 = vld [vmem:[#allocation7 + $0x50] sm:$0xff]  ;;  %vm437_vm1 = vmmov 0  }
  0x29   :  { %303 = vmatpush3.msra.mxu0 %v181_v15  ;;  %v176_v41 = vld [vmem:[#allocation7 + $0x48] sm:$0xff]  ;;  %v175_v42 = vld [vmem:[#allocation7 + $0x40] sm:$0xff]  ;;  %v174_v43 = vld [vmem:[#allocation7 + $0x38] sm:$0xff]  ;;  %332 = vmatprep.mubr.msk.f32.mxu0 %vm437_vm1, %v436_v3 }
  0x2a   :  { %v67_v6 = vsub.s32 %v64_v5, %v66_v4  ;;  %304 = vmatprep.subr.mxu0 %v436_v3  ;;  %v173_v44 = vld [vmem:[#allocation7 + $0x30] sm:$0xff]  ;;  %v172_v45 = vld [vmem:[#allocation7 + $0x28] sm:$0xff]  ;;  %v171_v46 = vld [vmem:[#allocation7 + $0x20] sm:$0xff] }
  0x2b   :  { %305 = vmatpush3.msra.mxu0 %v180_v20  ;;  %v170_v47 = vld [vmem:[#allocation7 + $0x18] sm:$0xff]  ;;  %v169_v48 = vld [vmem:[#allocation7 + $0x10] sm:$0xff]  ;;  %v168_v49 = vld [vmem:[#allocation7 + $0x8] sm:$0xff] }
  0x2c   :  { %v68_v17 = vrot.slane %v60_v10, %v67_v6  ;;  %v125_v18 = vrot.slane %v117_v11, %v67_v6  ;;  %v100_v19 = vrot.slane %v92_v12, %v67_v6  ;;  %v150_v21 = vrot.slane %v142_v16, %v67_v6  ;;  %306 = vmatprep.subr.mxu0 %v436_v3  ;;  %v167_v50 = vld [vmem:[#allocation7] sm:$0xff]  ;;  %v277_v51 = vld [vmem:[#allocation5] ss:$0 sm:$0xff]  ;;  %v278_v55 = vld [vmem:[%s514_s2] ss:$0 sm:$0xff]  ;;  %s267_s2 = sshll.u32 %s438_s11, 4  ;;  %s268_s2 = int_to_ptr.vmem [resolvable:$true] %s267_s2 }
  0x2d   :  { %307 = vmatpush3.msra.mxu0 %v179_v26  ;;  %v279_v56 = vld [vmem:[#allocation5 + $0x1] ss:$0 sm:$0xff]  ;;  %v280_v57 = vld [vmem:[#allocation5 + $0x2] ss:$0 sm:$0xff]  ;;  %v281_v59 = vld [vmem:[#allocation5 + $0x3] ss:$0 sm:$0xff]  ;;  %p409_p2 = scmp.lt.s32.totalorder %s268_s2, %s268_s2 }
  0x2e   :  { %v69_v22 = vcombine.high %v68_v17, %v68_v17  ;;  %v73_v23 = vsel %vm72_vm0, %v68_v17, 0.0  ;;  %v126_v24 = vcombine.high %v125_v18, %v125_v18  ;;  %v129_v25 = vsel %vm72_vm0, %v125_v18, 0.0  ;;  %308 = vmatprep.subr.mxu0 %v436_v3  ;;  %v282_v5 = vld [vmem:[%s516_s4] ss:$0 sm:$0xff]  ;;  %s404_s12 = scalar_lea.vmem %s268_s2, 32 }
  0x2f   :  { %v101_v27 = vcombine.high %v100_v19, %v100_v19  ;;  %v151_v28 = vcombine.high %v150_v21, %v150_v21  ;;  %v104_v31 = vsel %vm72_vm0, %v100_v19, 0.0  ;;  %v154_v32 = vsel %vm72_vm0, %v150_v21, 0.0  ;;  %309 = vmatpush3.msra.mxu0 %v178_v37  ;;  %p405_p1 = scmp.ne.s32.totalorder %s268_s2, %s404_s12  ;;  %p410_p3 = scmp.lt.s32.totalorder %s404_s12, %s404_s12 }
  0x30   :  { %v74_v29 = vsel %vm72_vm0, %v69_v22, 0.0  ;;  %v130_v30 = vsel %vm72_vm0, %v126_v24, 0.0  ;;  %310 = vmatprep.subr.mxu0 %v436_v3 }
  0x31   :  { %v75_v33 = vadd.f32 %v74_v29, %v73_v23  ;;  %v131_v34 = vadd.f32 %v130_v30, %v129_v25  ;;  %v105_v35 = vsel %vm72_vm0, %v101_v27, 0.0  ;;  %v155_v36 = vsel %vm72_vm0, %v151_v28, 0.0  ;;  %311 = vmatpush3.msra.mxu0 %v177_v40  ;;  %p411_p4 = por %p410_p3, %p409_p2 }
  0x32   :  { %v106_v38 = vadd.f32 %v105_v35, %v104_v31  ;;  %v156_v39 = vadd.f32 %v155_v36, %v154_v32  ;;  %312 = vmatprep.subr.mxu0 %v436_v3 }
  0x33   :  { %76 = vadd.xlane.f32.xlu0 %v75_v33  ;;  %132 = vadd.xlane.f32.xlu1 %v131_v34  ;;  %p412_p5 = pnand %p411_p4, %p405_p1 }
  0x34   :  { %313 = vmatpush3.msra.mxu0 %v176_v41 }
  0x35   :  { %314 = vmatprep.subr.mxu0 %v436_v3 }
  0x36   :  { %315 = vmatpush3.msra.mxu0 %v175_v42 }
  0x37   :  { %107 = vadd.xlane.f32.xlu0 %v106_v38  ;;  %157 = vadd.xlane.f32.xlu1 %v156_v39 }
  0x38   :  { %316 = vmatprep.subr.mxu0 %v436_v3 }
  0x39   :  { %317 = vmatpush3.msra.mxu0 %v174_v43 }
  0x3a   :  { %318 = vmatprep.subr.mxu0 %v436_v3 }
  0x3b   :  { %319 = vmatpush3.msra.mxu0 %v173_v44 }
  0x3c   :  { %320 = vmatprep.subr.mxu0 %v436_v3 }
  0x3d   :  { %321 = vmatpush3.msra.mxu0 %v172_v45 }
  0x3e   :  { %322 = vmatprep.subr.mxu0 %v436_v3 }
  0x3f   :  { %323 = vmatpush3.msra.mxu0 %v171_v46 }
  0x40   :  { %324 = vmatprep.subr.mxu0 %v436_v3 }
  0x41   :  { %325 = vmatpush3.msra.mxu0 %v170_v47 }
  0x42   :  { %326 = vmatprep.subr.mxu0 %v436_v3 }
  0x43   :  { %327 = vmatpush3.msra.mxu0 %v169_v48 }
  0x44   :  { %328 = vmatprep.subr.mxu0 %v436_v3 }
  0x45   :  { %329 = vmatpush3.msra.mxu0 %v168_v49 }
  0x46   :  { %330 = vmatprep.subr.mxu0 %v436_v3 }
  0x47   :  { %331 = vmatpush3.msra.mxu0 %v167_v50 }
  0xbc   :  { %v77_v52 = vpop.xlane.xlu0 %76  ;;  %v133_v53 = vpop.xlane.xlu1 %132 }
  0xbd   :  { %v83_v54 = vmul.f32 %v277_v51, %v77_v52  ;;  %v139_v63 = vmul.f32 %v280_v57, %v133_v53 }
  0xbf   :  { %v90_v61 = vadd.f32 %v278_v55, %v83_v54 }
  0xc0   :  { %v108_v58 = vpop.xlane.xlu0 %107  ;;  %v158_v60 = vpop.xlane.xlu1 %157 }
  0xc1   :  { %v114_v62 = vmul.f32 %v279_v56, %v108_v58  ;;  %v164_v1 = vmul.f32 %v281_v59, %v158_v60 }
  0xc3   :  { %v115_v0 = vadd.f32 %v114_v62, %v90_v61 }
  0xc5   :  { %v140_v2 = vadd.f32 %v139_v63, %v115_v0 }
  0xc7   :  { %v165_v3 = vadd.f32 %v164_v1, %v140_v2 }
  0xc9   :  { %v166_v4 = vmax.f32 %v165_v3, 0.0 }
  0xcb   :  { %333 = vmatmul.mubr.f32.vlgmr.msra.gmra.mxu0 %v166_v4 }
 0x18b   :  { %v256_v6 = vpop.f32.mrf.mxu0 }
 0x18c   :  { %v257_v7 = vadd.f32 %v282_v5, %v256_v6 }
 0x18d   :  { %v334_v8 = vpop.f32.mrf.mxu0 }
 0x18e   :  { %260 = vst [vmem:[#allocation8] sm:$0x3] %v257_v7 }
 0x18f   :  { %415 = shalt.err (!%p412_p5)
}
 0x190   :  { %270 = dma.vmem_to_hbm [thread:$0]  %s268_s2, 32, %s517_s5, [#allocation4]  }
 0x191   :  { %428 = dma.done.wait [#allocation4], 32  }
 0x192   :  { %429 = vsyncadd [#allocation4], 4294967264 }
 0x193   :  { %274 = vsyncpa [#allocation3], 1 }
 0x194   :  { %275 = vsyncpa [#allocation6], 1 }
 0x195   :  { %276 = vsyncpa [#allocation4], 1 }

</bundles_post_ra>
